<compile_context>
chip_gen: v7x
topology: tpu7x:2x2x1
jax: 0.10.0
libtpu: 0.0.40
codegen_flags: <defaults>
</compile_context>

<pallas_src>
import jax
import jax.numpy as jnp
import numpy as np
from jax.experimental import pallas as pl
from jax.experimental.pallas import tpu as pltpu


# --------------------------------------------------------------------------- #
# Kernel
# --------------------------------------------------------------------------- #
def perceptron_kernel(x_ref, w1_ref, b1_ref, w2_ref, b2_ref,
                      w3_ref, b3_ref, w4_ref, b4_ref, o_ref):
    mxu = jnp.bfloat16
    act = b1_ref.dtype                      # bf16 on v6e/v7x, f32 on v5e
    # In-kernel cast: x streams from HBM as f32 (4 B/elem total) and only the
    # MXU operand is bf16.  The cast rides the VPU slot slack.
    x = x_ref[...].astype(mxu)
    # l1 + relu
    h = jnp.dot(x, w1_ref[...], preferred_element_type=jnp.float32)
    h = jnp.maximum(h.astype(act) + b1_ref[...], 0).astype(mxu)
    # l2 + relu
    h = jnp.dot(h, w2_ref[...], preferred_element_type=jnp.float32)
    h = jnp.maximum(h.astype(act) + b2_ref[...], 0).astype(mxu)
    # l3 + relu
    h = jnp.dot(h, w3_ref[...], preferred_element_type=jnp.float32)
    h = jnp.maximum(h.astype(act) + b3_ref[...], 0).astype(mxu)
    # l4 + sigmoid (f32)
    logits = jnp.dot(h, w4_ref[...], preferred_element_type=jnp.float32)
    logits = logits + b4_ref[...]
    o_ref[...] = jax.nn.sigmoid(logits).astype(o_ref.dtype)


# --------------------------------------------------------------------------- #
# Helpers
# --------------------------------------------------------------------------- #
def _round_up(n, m):
    return (n + m - 1) // m * m


def _device_kind():
    try:
        return jax.devices()[0].device_kind.lower()
    except Exception:
        return ""


def _vmem_capacity_bytes():
    try:
        cap = int(pltpu.get_tpu_info().vmem_capacity_bytes)
        if cap > 0:
            return cap
    except Exception:
        pass
    # v7x: 64 MiB per TC; v5e/v6e (and older): 128 MiB.
    return (64 << 20) if "v7" in _device_kind() else (128 << 20)


def _vmem_tile_bytes(rows, cols, dtype):
    """VMEM footprint of one (rows, cols) tile including (sublane, lane) padding."""
    itemsize = np.dtype(dtype).itemsize
    sublane = 8 * max(1, 4 // itemsize)          # 8 for f32, 16 for bf16
    return _round_up(max(int(rows), 1), sublane) * \
        _round_up(max(int(cols), 1), 128) * itemsize


# --------------------------------------------------------------------------- #
# One-time parameter preparation (cache the result; do NOT re-run per forward)
# --------------------------------------------------------------------------- #
def prepare_params(params, *, act_dtype=None, pad_multiple=None):
    """Convert f32 ((w,b) x 4) params (w: [in,out], b: [1,out]) into the
    kernel's resident layout: bf16 weights, hidden dims zero-padded to an
    MXU-friendly multiple, elementwise-dtype biases for layers 1-3."""
    (w1, b1), (w2, b2), (w3, b3), (w4, b4) = params
    hidden = w1.shape[1]
    kind = _device_kind()
    newer = ("v6" in kind) or ("v7" in kind)
    if act_dtype is None:
        act_dtype = jnp.bfloat16 if newer else jnp.float32   # no bf16 VALU on v5e
    if pad_multiple is None:
        pad_multiple = 256 if (newer and hidden > 128) else 128
    hp = _round_up(hidden, pad_multiple)
    dh = hp - hidden

    def pad(a, rows, cols):
        return jnp.pad(a, ((0, rows), (0, cols))) if (rows or cols) else a

    return (
        pad(w1, 0, dh).astype(jnp.bfloat16),
        pad(b1, 0, dh).astype(act_dtype),
        pad(w2, dh, dh).astype(jnp.bfloat16),
        pad(b2, 0, dh).astype(act_dtype),
        pad(w3, dh, dh).astype(jnp.bfloat16),
        pad(b3, 0, dh).astype(act_dtype),
        pad(w4, dh, 0).astype(jnp.bfloat16),
        b4.astype(jnp.float32),
    )


# --------------------------------------------------------------------------- #
# Forward
# --------------------------------------------------------------------------- #
def perceptron_forward(x, prepped, *, tb=None, out_dtype=jnp.float32):
    """x: [B, 8] f32.  prepped: output of prepare_params (reuse across calls)."""
    w1, b1, w2, b2, w3, b3, w4, b4 = prepped
    weight_args = (w1, b1, w2, b2, w3, b3, w4, b4)
    B, in_features = x.shape
    hidden = w1.shape[1]
    num_classes = w4.shape[1]
    act_dtype = b1.dtype

    # ---- VMEM accounting with lane/sublane padding -------------------------
    capacity = _vmem_capacity_bytes()
    usable = int(min(capacity - (8 << 20), 100 << 20))   # headroom; <=100 MiB
    resident_bytes = sum(_vmem_tile_bytes(a.shape[0], a.shape[1], a.dtype)
                         for a in weight_args)

    def budget(tb_, resident_buffers):
        stream = 2 * (_vmem_tile_bytes(tb_, in_features, x.dtype)
                      + _vmem_tile_bytes(tb_, num_classes, out_dtype))
        interm = 3 * _vmem_tile_bytes(tb_, hidden, act_dtype)  # fused live values
        return resident_buffers * resident_bytes + stream + interm

    # ---- batch tile: >=2-4 grid steps when B allows (megacore + pipelining),
    # ---- capped at 4096 rows, shrunk if the padded VMEM budget doesn't fit.
    if tb is None:
        if B <= 16:
            tb = B
        else:
            steps = 4 if B >= 1024 else 2
            tb = min(_round_up(pl.cdiv(B, steps), 8), 4096)
    while tb > 8 and budget(tb, 2) > usable:
        tb = max(8, (tb // 2 // 8) * 8)
    grid = (pl.cdiv(B, tb),)

    need = budget(tb, 2)                    # worst case: double-buffered residents
    vmem_limit = None
    if need > (12 << 20):                   # above (part of) the default scoped limit
        vmem_limit = int(min(max(2 * need, 32 << 20), usable))

    compiler_params = pltpu.CompilerParams(
        dimension_semantics=("parallel",),  # megacore sharding on v7x
        vmem_limit_bytes=vmem_limit,
    )

    # Advisory cost estimate.  With resident weights this kernel is HBM-bound
    # on the x stream only for small hidden (<~256); for larger hidden it is
    # MXU-bound on the two hidden x hidden matmuls.
    flops = 2 * B * (in_features * hidden + 2 * hidden * hidden
                     + hidden * num_classes)
    bytes_accessed = (B * in_features * np.dtype(x.dtype).itemsize
                      + sum(int(a.size) * np.dtype(a.dtype).itemsize
                            for a in weight_args)
                      + B * num_classes * np.dtype(out_dtype).itemsize)
    cost = pl.CostEstimate(flops=flops, transcendentals=B * num_classes,
                           bytes_accessed=bytes_accessed)

    x_spec = pl.BlockSpec((tb, in_features), lambda i: (i, 0))
    out_spec = pl.BlockSpec((tb, num_classes), lambda i: (i, 0))

    def resident_spec(arr, single_buffer):
        # Constant index_map -> block stays in VMEM for the whole grid.
        # Buffered(1) drops the useless second buffer, halving resident VMEM.
        if single_buffer:
            return pl.BlockSpec(arr.shape, lambda i: (0, 0),
                                pipeline_mode=pl.Buffered(1))
        return pl.BlockSpec(arr.shape, lambda i: (0, 0))

    def build(single_buffer):
        return pl.pallas_call(
            perceptron_kernel,
            out_shape=jax.ShapeDtypeStruct((B, num_classes), out_dtype),
            grid=grid,
            in_specs=[x_spec] + [resident_spec(a, single_buffer)
                                 for a in weight_args],
            out_specs=out_spec,
            compiler_params=compiler_params,
            cost_estimate=cost,
        )

    try:
        return build(True)(x, *weight_args)
    except Exception:
        # Fallback for JAX versions that reject pipeline_mode on this path:
        # default double-buffered resident blocks (correct, uses more VMEM).
        return build(False)(x, *weight_args)


# --------------------------------------------------------------------------- #
# Init + reference (pure JAX) for the self-test
# --------------------------------------------------------------------------- #
def init_params(key, hidden_size, num_classes, in_features=8):
    # Mimics nn.Linear's uniform(-1/sqrt(fan_in), 1/sqrt(fan_in)) init.
    def linear(key, fan_in, fan_out):
        kw, kb = jax.random.split(key)
        bound = 1.0 / jnp.sqrt(jnp.float32(fan_in))
        w = jax.random.uniform(kw, (fan_in, fan_out), jnp.float32, -bound, bound)
        b = jax.random.uniform(kb, (1, fan_out), jnp.float32, -bound, bound)
        return w, b

    k1, k2, k3, k4 = jax.random.split(key, 4)
    return (
        linear(k1, in_features, hidden_size),
        linear(k2, hidden_size, hidden_size),
        linear(k3, hidden_size, hidden_size),
        linear(k4, hidden_size, num_classes),
    )


def perceptron_ref(x, params):
    (w1, b1), (w2, b2), (w3, b3), (w4, b4) = params
    h = jax.nn.relu(x @ w1 + b1)
    h = jax.nn.relu(h @ w2 + b2)
    h = jax.nn.relu(h @ w3 + b3)
    return jax.nn.sigmoid(h @ w4 + b4)


if __name__ == "__main__":
    key = jax.random.PRNGKey(0)
    kx, kp = jax.random.split(key)

    batch, hidden_size, num_classes = 8, 32, 4
    x = jax.random.normal(kx, (batch, 8), jnp.float32)
    params = init_params(kp, hidden_size, num_classes)

    prepped = prepare_params(params)       # one-time: bf16 cast + hidden padding
    out = perceptron_forward(x, prepped)
    jax.block_until_ready(out)

    ref = perceptron_ref(x, params)        # f32 reference
    assert out.shape == (batch, num_classes)
    # Accuracy contract: bf16 MXU operands (f32 accumulation) -> ~1e-2 rel error.
    assert jnp.allclose(out, ref, atol=2e-2, rtol=2e-2)

    print("KERNEL_OK")
</pallas_src>

<mosaic_0001>
module attributes {stable_mosaic.version = 11 : i64} {
  func.func @perceptron_kernel(%arg0: i32, %arg1: memref<8x8xf32, #tpu.memory_space<vmem>>, %arg2: memref<8x128xbf16, #tpu.memory_space<vmem>>, %arg3: memref<1x128xf32, #tpu.memory_space<vmem>>, %arg4: memref<128x128xbf16, #tpu.memory_space<vmem>>, %arg5: memref<1x128xf32, #tpu.memory_space<vmem>>, %arg6: memref<128x128xbf16, #tpu.memory_space<vmem>>, %arg7: memref<1x128xf32, #tpu.memory_space<vmem>>, %arg8: memref<128x4xbf16, #tpu.memory_space<vmem>>, %arg9: memref<1x4xf32, #tpu.memory_space<vmem>>, %arg10: memref<8x4xf32, #tpu.memory_space<vmem>>) attributes {dimension_semantics = [#tpu.dimension_semantics<parallel>], iteration_bounds = array<i64: 1>, scalar_prefetch = 0 : i64, scratch_operands = 0 : i64, tpu.core_type = #tpu.core_type<tc>, window_params = [{transform_indices = @transform_0, window_bounds = array<i64: 8, 8>}, {pipeline_mode = #tpu.pipeline_mode<synchronous>, transform_indices = @transform_1, window_bounds = array<i64: 8, 128>}, {pipeline_mode = #tpu.pipeline_mode<synchronous>, transform_indices = @transform_2, window_bounds = array<i64: 1, 128>}, {pipeline_mode = #tpu.pipeline_mode<synchronous>, transform_indices = @transform_3, window_bounds = array<i64: 128, 128>}, {pipeline_mode = #tpu.pipeline_mode<synchronous>, transform_indices = @transform_4, window_bounds = array<i64: 1, 128>}, {pipeline_mode = #tpu.pipeline_mode<synchronous>, transform_indices = @transform_5, window_bounds = array<i64: 128, 128>}, {pipeline_mode = #tpu.pipeline_mode<synchronous>, transform_indices = @transform_6, window_bounds = array<i64: 1, 128>}, {pipeline_mode = #tpu.pipeline_mode<synchronous>, transform_indices = @transform_7, window_bounds = array<i64: 128, 4>}, {pipeline_mode = #tpu.pipeline_mode<synchronous>, transform_indices = @transform_8, window_bounds = array<i64: 1, 4>}, {transform_indices = @transform_9, window_bounds = array<i64: 8, 4>}]} {
    %c0 = arith.constant 0 : index
    %c0_0 = arith.constant 0 : index
    %0 = vector.load %arg1[%c0, %c0_0] : memref<8x8xf32, #tpu.memory_space<vmem>>, vector<8x8xf32>
    %1 = arith.truncf %0 : vector<8x8xf32> to vector<8x8xbf16>
    %c0_1 = arith.constant 0 : index
    %c0_2 = arith.constant 0 : index
    %2 = vector.load %arg2[%c0_1, %c0_2] : memref<8x128xbf16, #tpu.memory_space<vmem>>, vector<8x128xbf16>
    %cst = arith.constant dense<0.000000e+00> : vector<8x128xf32>
    %3 = tpu.matmul %1, %2, %cst {dimension_numbers = #tpu.dot_dimension_numbers<[1], [0], [0], [1], [0, 0, 1, 1], [], []>} : vector<8x8xbf16>, vector<8x128xbf16>, vector<8x128xf32> -> vector<8x128xf32>
    %c0_3 = arith.constant 0 : index
    %c0_4 = arith.constant 0 : index
    %4 = vector.load %arg3[%c0_3, %c0_4] : memref<1x128xf32, #tpu.memory_space<vmem>>, vector<1x128xf32>
    %5 = vector.broadcast %4 : vector<1x128xf32> to vector<8x128xf32>
    %6 = arith.addf %3, %5 : vector<8x128xf32>
    %cst_5 = arith.constant 0.000000e+00 : f32
    %7 = vector.broadcast %cst_5 : f32 to vector<8x128xf32>
    %8 = arith.maximumf %6, %7 : vector<8x128xf32>
    %9 = arith.truncf %8 : vector<8x128xf32> to vector<8x128xbf16>
    %c0_6 = arith.constant 0 : index
    %c0_7 = arith.constant 0 : index
    %10 = vector.load %arg4[%c0_6, %c0_7] : memref<128x128xbf16, #tpu.memory_space<vmem>>, vector<128x128xbf16>
    %cst_8 = arith.constant dense<0.000000e+00> : vector<8x128xf32>
    %11 = tpu.matmul %9, %10, %cst_8 {dimension_numbers = #tpu.dot_dimension_numbers<[1], [0], [0], [1], [0, 0, 1, 1], [], []>} : vector<8x128xbf16>, vector<128x128xbf16>, vector<8x128xf32> -> vector<8x128xf32>
    %c0_9 = arith.constant 0 : index
    %c0_10 = arith.constant 0 : index
    %12 = vector.load %arg5[%c0_9, %c0_10] : memref<1x128xf32, #tpu.memory_space<vmem>>, vector<1x128xf32>
    %13 = vector.broadcast %12 : vector<1x128xf32> to vector<8x128xf32>
    %14 = arith.addf %11, %13 : vector<8x128xf32>
    %cst_11 = arith.constant 0.000000e+00 : f32
    %15 = vector.broadcast %cst_11 : f32 to vector<8x128xf32>
    %16 = arith.maximumf %14, %15 : vector<8x128xf32>
    %17 = arith.truncf %16 : vector<8x128xf32> to vector<8x128xbf16>
    %c0_12 = arith.constant 0 : index
    %c0_13 = arith.constant 0 : index
    %18 = vector.load %arg6[%c0_12, %c0_13] : memref<128x128xbf16, #tpu.memory_space<vmem>>, vector<128x128xbf16>
    %cst_14 = arith.constant dense<0.000000e+00> : vector<8x128xf32>
    %19 = tpu.matmul %17, %18, %cst_14 {dimension_numbers = #tpu.dot_dimension_numbers<[1], [0], [0], [1], [0, 0, 1, 1], [], []>} : vector<8x128xbf16>, vector<128x128xbf16>, vector<8x128xf32> -> vector<8x128xf32>
    %c0_15 = arith.constant 0 : index
    %c0_16 = arith.constant 0 : index
    %20 = vector.load %arg7[%c0_15, %c0_16] : memref<1x128xf32, #tpu.memory_space<vmem>>, vector<1x128xf32>
    %21 = vector.broadcast %20 : vector<1x128xf32> to vector<8x128xf32>
    %22 = arith.addf %19, %21 : vector<8x128xf32>
    %cst_17 = arith.constant 0.000000e+00 : f32
    %23 = vector.broadcast %cst_17 : f32 to vector<8x128xf32>
    %24 = arith.maximumf %22, %23 : vector<8x128xf32>
    %25 = arith.truncf %24 : vector<8x128xf32> to vector<8x128xbf16>
    %c0_18 = arith.constant 0 : index
    %c0_19 = arith.constant 0 : index
    %26 = vector.load %arg8[%c0_18, %c0_19] : memref<128x4xbf16, #tpu.memory_space<vmem>>, vector<128x4xbf16>
    %cst_20 = arith.constant dense<0.000000e+00> : vector<8x4xf32>
    %27 = tpu.matmul %25, %26, %cst_20 {dimension_numbers = #tpu.dot_dimension_numbers<[1], [0], [0], [1], [0, 0, 1, 1], [], []>} : vector<8x128xbf16>, vector<128x4xbf16>, vector<8x4xf32> -> vector<8x4xf32>
    %c0_21 = arith.constant 0 : index
    %c0_22 = arith.constant 0 : index
    %28 = vector.load %arg9[%c0_21, %c0_22] : memref<1x4xf32, #tpu.memory_space<vmem>>, vector<1x4xf32>
    %29 = vector.broadcast %28 : vector<1x4xf32> to vector<8x4xf32>
    %30 = arith.addf %27, %29 : vector<8x4xf32>
    %31 = arith.negf %30 : vector<8x4xf32>
    %32 = math.exp %31 : vector<8x4xf32>
    %cst_23 = arith.constant 1.000000e+00 : f32
    %33 = vector.broadcast %cst_23 : f32 to vector<8x4xf32>
    %34 = arith.addf %33, %32 : vector<8x4xf32>
    %35 = arith.divf %33, %34 : vector<8x4xf32>
    %c0_24 = arith.constant 0 : index
    %c0_25 = arith.constant 0 : index
    %36 = vector.load %arg10[%c0_24, %c0_25] : memref<8x4xf32, #tpu.memory_space<vmem>>, vector<8x4xf32>
    tpu.vector_store %arg10[%c0_24, %c0_25], %35 {strides = array<i32>} : memref<8x4xf32, #tpu.memory_space<vmem>>, vector<8x4xf32>,
    return
  }
  func.func @transform_0(%arg0: i32) -> (i32, i32) {
    %c0_i32 = arith.constant 0 : i32
    %c0_i32_0 = arith.constant 0 : i32
    return %arg0, %c0_i32 : i32, i32
  }
  func.func @transform_1(%arg0: i32) -> (i32, i32) {
    %c0_i32 = arith.constant 0 : i32
    %c0_i32_0 = arith.constant 0 : i32
    %c0_i32_1 = arith.constant 0 : i32
    return %c0_i32, %c0_i32_0 : i32, i32
  }
  func.func @transform_2(%arg0: i32) -> (i32, i32) {
    %c0_i32 = arith.constant 0 : i32
    %c0_i32_0 = arith.constant 0 : i32
    %c0_i32_1 = arith.constant 0 : i32
    return %c0_i32, %c0_i32_0 : i32, i32
  }
  func.func @transform_3(%arg0: i32) -> (i32, i32) {
    %c0_i32 = arith.constant 0 : i32
    %c0_i32_0 = arith.constant 0 : i32
    %c0_i32_1 = arith.constant 0 : i32
    return %c0_i32, %c0_i32_0 : i32, i32
  }
  func.func @transform_4(%arg0: i32) -> (i32, i32) {
    %c0_i32 = arith.constant 0 : i32
    %c0_i32_0 = arith.constant 0 : i32
    %c0_i32_1 = arith.constant 0 : i32
    return %c0_i32, %c0_i32_0 : i32, i32
  }
  func.func @transform_5(%arg0: i32) -> (i32, i32) {
    %c0_i32 = arith.constant 0 : i32
    %c0_i32_0 = arith.constant 0 : i32
    %c0_i32_1 = arith.constant 0 : i32
    return %c0_i32, %c0_i32_0 : i32, i32
  }
  func.func @transform_6(%arg0: i32) -> (i32, i32) {
    %c0_i32 = arith.constant 0 : i32
    %c0_i32_0 = arith.constant 0 : i32
    %c0_i32_1 = arith.constant 0 : i32
    return %c0_i32, %c0_i32_0 : i32, i32
  }
  func.func @transform_7(%arg0: i32) -> (i32, i32) {
    %c0_i32 = arith.constant 0 : i32
    %c0_i32_0 = arith.constant 0 : i32
    %c0_i32_1 = arith.constant 0 : i32
    return %c0_i32, %c0_i32_0 : i32, i32
  }
  func.func @transform_8(%arg0: i32) -> (i32, i32) {
    %c0_i32 = arith.constant 0 : i32
    %c0_i32_0 = arith.constant 0 : i32
    %c0_i32_1 = arith.constant 0 : i32
    return %c0_i32, %c0_i32_0 : i32, i32
  }
  func.func @transform_9(%arg0: i32) -> (i32, i32) {
    %c0_i32 = arith.constant 0 : i32
    %c0_i32_0 = arith.constant 0 : i32
    return %arg0, %c0_i32 : i32, i32
  }
}

module attributes {stable_mosaic.version = 11 : i64} {
  func.func @perceptron_kernel(%arg0: i32, %arg1: memref<8x8xf32, #tpu.memory_space<vmem>>, %arg2: memref<8x128xbf16, #tpu.memory_space<vmem>>, %arg3: memref<1x128xf32, #tpu.memory_space<vmem>>, %arg4: memref<128x128xbf16, #tpu.memory_space<vmem>>, %arg5: memref<1x128xf32, #tpu.memory_space<vmem>>, %arg6: memref<128x128xbf16, #tpu.memory_space<vmem>>, %arg7: memref<1x128xf32, #tpu.memory_space<vmem>>, %arg8: memref<128x4xbf16, #tpu.memory_space<vmem>>, %arg9: memref<1x4xf32, #tpu.memory_space<vmem>>, %arg10: memref<8x4xf32, #tpu.memory_space<vmem>>) attributes {dimension_semantics = [#tpu.dimension_semantics<parallel>], iteration_bounds = array<i64: 1>, scalar_prefetch = 0 : i64, scratch_operands = 0 : i64, tpu.core_type = #tpu.core_type<tc>, window_params = [{transform_indices = @transform_0, window_bounds = array<i64: 8, 8>}, {pipeline_mode = #tpu.pipeline_mode<synchronous>, transform_indices = @transform_1, window_bounds = array<i64: 8, 128>}, {pipeline_mode = #tpu.pipeline_mode<synchronous>, transform_indices = @transform_2, window_bounds = array<i64: 1, 128>}, {pipeline_mode = #tpu.pipeline_mode<synchronous>, transform_indices = @transform_3, window_bounds = array<i64: 128, 128>}, {pipeline_mode = #tpu.pipeline_mode<synchronous>, transform_indices = @transform_4, window_bounds = array<i64: 1, 128>}, {pipeline_mode = #tpu.pipeline_mode<synchronous>, transform_indices = @transform_5, window_bounds = array<i64: 128, 128>}, {pipeline_mode = #tpu.pipeline_mode<synchronous>, transform_indices = @transform_6, window_bounds = array<i64: 1, 128>}, {pipeline_mode = #tpu.pipeline_mode<synchronous>, transform_indices = @transform_7, window_bounds = array<i64: 128, 4>}, {pipeline_mode = #tpu.pipeline_mode<synchronous>, transform_indices = @transform_8, window_bounds = array<i64: 1, 4>}, {transform_indices = @transform_9, window_bounds = array<i64: 8, 4>}]} {
    %c0 = arith.constant 0 : index
    %c0_0 = arith.constant 0 : index
    %0 = vector.load %arg1[%c0, %c0_0] : memref<8x8xf32, #tpu.memory_space<vmem>>, vector<8x8xf32>
    %1 = arith.truncf %0 : vector<8x8xf32> to vector<8x8xbf16>
    %c0_1 = arith.constant 0 : index
    %c0_2 = arith.constant 0 : index
    %2 = vector.load %arg2[%c0_1, %c0_2] : memref<8x128xbf16, #tpu.memory_space<vmem>>, vector<8x128xbf16>
    %cst = arith.constant dense<0.000000e+00> : vector<8x128xf32>
    %3 = tpu.matmul %1, %2, %cst {dimension_numbers = #tpu.dot_dimension_numbers<[1], [0], [0], [1], [0, 0, 1, 1], [], []>} : vector<8x8xbf16>, vector<8x128xbf16>, vector<8x128xf32> -> vector<8x128xf32>
    %c0_3 = arith.constant 0 : index
    %c0_4 = arith.constant 0 : index
    %4 = vector.load %arg3[%c0_3, %c0_4] : memref<1x128xf32, #tpu.memory_space<vmem>>, vector<1x128xf32>
    %5 = vector.broadcast %4 : vector<1x128xf32> to vector<8x128xf32>
    %6 = arith.addf %3, %5 : vector<8x128xf32>
    %cst_5 = arith.constant 0.000000e+00 : f32
    %7 = vector.broadcast %cst_5 : f32 to vector<8x128xf32>
    %8 = arith.maximumf %6, %7 : vector<8x128xf32>
    %9 = arith.truncf %8 : vector<8x128xf32> to vector<8x128xbf16>
    %c0_6 = arith.constant 0 : index
    %c0_7 = arith.constant 0 : index
    %10 = vector.load %arg4[%c0_6, %c0_7] : memref<128x128xbf16, #tpu.memory_space<vmem>>, vector<128x128xbf16>
    %cst_8 = arith.constant dense<0.000000e+00> : vector<8x128xf32>
    %11 = tpu.matmul %9, %10, %cst_8 {dimension_numbers = #tpu.dot_dimension_numbers<[1], [0], [0], [1], [0, 0, 1, 1], [], []>} : vector<8x128xbf16>, vector<128x128xbf16>, vector<8x128xf32> -> vector<8x128xf32>
    %c0_9 = arith.constant 0 : index
    %c0_10 = arith.constant 0 : index
    %12 = vector.load %arg5[%c0_9, %c0_10] : memref<1x128xf32, #tpu.memory_space<vmem>>, vector<1x128xf32>
    %13 = vector.broadcast %12 : vector<1x128xf32> to vector<8x128xf32>
    %14 = arith.addf %11, %13 : vector<8x128xf32>
    %cst_11 = arith.constant 0.000000e+00 : f32
    %15 = vector.broadcast %cst_11 : f32 to vector<8x128xf32>
    %16 = arith.maximumf %14, %15 : vector<8x128xf32>
    %17 = arith.truncf %16 : vector<8x128xf32> to vector<8x128xbf16>
    %c0_12 = arith.constant 0 : index
    %c0_13 = arith.constant 0 : index
    %18 = vector.load %arg6[%c0_12, %c0_13] : memref<128x128xbf16, #tpu.memory_space<vmem>>, vector<128x128xbf16>
    %cst_14 = arith.constant dense<0.000000e+00> : vector<8x128xf32>
    %19 = tpu.matmul %17, %18, %cst_14 {dimension_numbers = #tpu.dot_dimension_numbers<[1], [0], [0], [1], [0, 0, 1, 1], [], []>} : vector<8x128xbf16>, vector<128x128xbf16>, vector<8x128xf32> -> vector<8x128xf32>
    %c0_15 = arith.constant 0 : index
    %c0_16 = arith.constant 0 : index
    %20 = vector.load %arg7[%c0_15, %c0_16] : memref<1x128xf32, #tpu.memory_space<vmem>>, vector<1x128xf32>
    %21 = vector.broadcast %20 : vector<1x128xf32> to vector<8x128xf32>
    %22 = arith.addf %19, %21 : vector<8x128xf32>
    %cst_17 = arith.constant 0.000000e+00 : f32
    %23 = vector.broadcast %cst_17 : f32 to vector<8x128xf32>
    %24 = arith.maximumf %22, %23 : vector<8x128xf32>
    %25 = arith.truncf %24 : vector<8x128xf32> to vector<8x128xbf16>
    %c0_18 = arith.constant 0 : index
    %c0_19 = arith.constant 0 : index
    %26 = vector.load %arg8[%c0_18, %c0_19] : memref<128x4xbf16, #tpu.memory_space<vmem>>, vector<128x4xbf16>
    %cst_20 = arith.constant dense<0.000000e+00> : vector<8x4xf32>
    %27 = tpu.matmul %25, %26, %cst_20 {dimension_numbers = #tpu.dot_dimension_numbers<[1], [0], [0], [1], [0, 0, 1, 1], [], []>} : vector<8x128xbf16>, vector<128x4xbf16>, vector<8x4xf32> -> vector<8x4xf32>
    %c0_21 = arith.constant 0 : index
    %c0_22 = arith.constant 0 : index
    %28 = vector.load %arg9[%c0_21, %c0_22] : memref<1x4xf32, #tpu.memory_space<vmem>>, vector<1x4xf32>
    %29 = vector.broadcast %28 : vector<1x4xf32> to vector<8x4xf32>
    %30 = arith.addf %27, %29 : vector<8x4xf32>
    %31 = arith.negf %30 : vector<8x4xf32>
    %32 = math.exp %31 : vector<8x4xf32>
    %cst_23 = arith.constant 1.000000e+00 : f32
    %33 = vector.broadcast %cst_23 : f32 to vector<8x4xf32>
    %34 = arith.addf %33, %32 : vector<8x4xf32>
    %35 = arith.divf %33, %34 : vector<8x4xf32>
    %c0_24 = arith.constant 0 : index
    %c0_25 = arith.constant 0 : index
    %36 = vector.load %arg10[%c0_24, %c0_25] : memref<8x4xf32, #tpu.memory_space<vmem>>, vector<8x4xf32>
    tpu.vector_store %arg10[%c0_24, %c0_25], %35 {strides = array<i32>} : memref<8x4xf32, #tpu.memory_space<vmem>>, vector<8x4xf32>,
    return
  }
  func.func @transform_0(%arg0: i32) -> (i32, i32) {
    %c0_i32 = arith.constant 0 : i32
    %c0_i32_0 = arith.constant 0 : i32
    return %arg0, %c0_i32 : i32, i32
  }
  func.func @transform_1(%arg0: i32) -> (i32, i32) {
    %c0_i32 = arith.constant 0 : i32
    %c0_i32_0 = arith.constant 0 : i32
    %c0_i32_1 = arith.constant 0 : i32
    return %c0_i32, %c0_i32_0 : i32, i32
  }
  func.func @transform_2(%arg0: i32) -> (i32, i32) {
    %c0_i32 = arith.constant 0 : i32
    %c0_i32_0 = arith.constant 0 : i32
    %c0_i32_1 = arith.constant 0 : i32
    return %c0_i32, %c0_i32_0 : i32, i32
  }
  func.func @transform_3(%arg0: i32) -> (i32, i32) {
    %c0_i32 = arith.constant 0 : i32
    %c0_i32_0 = arith.constant 0 : i32
    %c0_i32_1 = arith.constant 0 : i32
    return %c0_i32, %c0_i32_0 : i32, i32
  }
  func.func @transform_4(%arg0: i32) -> (i32, i32) {
    %c0_i32 = arith.constant 0 : i32
    %c0_i32_0 = arith.constant 0 : i32
    %c0_i32_1 = arith.constant 0 : i32
    return %c0_i32, %c0_i32_0 : i32, i32
  }
  func.func @transform_5(%arg0: i32) -> (i32, i32) {
    %c0_i32 = arith.constant 0 : i32
    %c0_i32_0 = arith.constant 0 : i32
    %c0_i32_1 = arith.constant 0 : i32
    return %c0_i32, %c0_i32_0 : i32, i32
  }
  func.func @transform_6(%arg0: i32) -> (i32, i32) {
    %c0_i32 = arith.constant 0 : i32
    %c0_i32_0 = arith.constant 0 : i32
    %c0_i32_1 = arith.constant 0 : i32
    return %c0_i32, %c0_i32_0 : i32, i32
  }
  func.func @transform_7(%arg0: i32) -> (i32, i32) {
    %c0_i32 = arith.constant 0 : i32
    %c0_i32_0 = arith.constant 0 : i32
    %c0_i32_1 = arith.constant 0 : i32
    return %c0_i32, %c0_i32_0 : i32, i32
  }
  func.func @transform_8(%arg0: i32) -> (i32, i32) {
    %c0_i32 = arith.constant 0 : i32
    %c0_i32_0 = arith.constant 0 : i32
    %c0_i32_1 = arith.constant 0 : i32
    return %c0_i32, %c0_i32_0 : i32, i32
  }
  func.func @transform_9(%arg0: i32) -> (i32, i32) {
    %c0_i32 = arith.constant 0 : i32
    %c0_i32_0 = arith.constant 0 : i32
    return %arg0, %c0_i32 : i32, i32
  }
}

</mosaic_0001>

<bundles_post_ra>
// kernel: tpu_custom_call.1
= control target key start
LH: loop header
LB: loop body
LE: loop exit
PB: predicated region body
PF: predicated region fallthrough
CT: control target
= control target key end

     0   :  { %14 = vsyncpa [#allocation3], 0  ;;  %s639_s30 = smov [#allocation2]   ;;  %s808_s0 = inlined_call_operand.vmem [shape: f32[8,8], index: 0, kind: input, shape index: {}]   ;;  %s809_s1 = inlined_call_operand.vmem [shape: bf16[8,128], index: 1, kind: input, shape index: {}]   ;;  %s810_s2 = inlined_call_operand.vmem [shape: f32[1,128], index: 2, kind: input, shape index: {}]   ;;  %s811_s3 = inlined_call_operand.vmem [shape: bf16[128,128], index: 3, kind: input, shape index: {}]   ;;  %s812_s4 = inlined_call_operand.vmem [shape: f32[1,128], index: 4, kind: input, shape index: {}]   ;;  %s813_s5 = inlined_call_operand.hbm [shape: bf16[128,128], index: 5, kind: input, shape index: {}]   ;;  %s814_s6 = inlined_call_operand.vmem [shape: f32[1,128], index: 6, kind: input, shape index: {}]   ;;  %s815_s7 = inlined_call_operand.vmem [shape: bf16[128,4], index: 7, kind: input, shape index: {}]   ;;  %s816_s8 = inlined_call_operand.vmem [shape: f32[1,4], index: 8, kind: input, shape index: {}]   ;;  %s817_s9 = inlined_call_operand.vmem [shape: f32[8,4], index: 9, kind: output, shape index: {}]  }
   0x1   :  { %s30_s10 = sshll.u32 %s639_s30, 4  ;;  %s615_s13 = scalar_lea.hbm %s813_s5, 1024  ;;  %s31_s10 = int_to_ptr.vmem [resolvable:$true] %s30_s10 }
   0x2   :  { %p616_p0 = scmp.ne.s32.totalorder %s813_s5, %s615_s13  ;;  %p619_p1 = scmp.lt.u32.totalorder %s615_s13, %s813_s5 }
   0x4   :  { %p621_p2 = pnand %p619_p1, %p616_p0 }
   0x6   :  { %624 = shalt.err (!%p621_p2)
}
   0x7   :  { %s625_s18 = scalar_lea.vmem %s31_s10, 1024  ;;  %p630_p4 = scmp.lt.s32.totalorder %s31_s10, %s31_s10 }
   0x8   :  { %p626_p3 = scmp.ne.s32.totalorder %s31_s10, %s625_s18  ;;  %p631_p5 = scmp.lt.s32.totalorder %s625_s18, %s625_s18 }
   0xa   :  { %p632_p6 = por %p631_p5, %p630_p4 }
   0xc   :  { %p633_p7 = pnand %p632_p6, %p626_p3 }
   0xe   :  { %636 = shalt.err (!%p633_p7)
}
   0xf   :  { %s640_s19 = smov 64   ;;  %s641_s20 = smov 4  }
  0x10   :  { %36 = dma.hbm_to_vmem [thread:$0]  %s813_s5, 1024, %s31_s10, [#allocation3], %s640_s19, %s640_s19, %s641_s20  }
  0x11   :  { %637 = dma.done.wait [#allocation3], 1024  }
  0x12   :  { %638 = vsyncadd [#allocation3], 4294966272  ;;  %v642_v0 = vmov 0.0   ;;  %vm643_vm0 = vmmov 0   ;;  %vm61_vm1 = vcmask 1043456   ;;  %v47_v2 = vld [vmem:[%s808_s0] sm:$0xff] }
  0x13   :  { %516 = vmatprep.subr.bf16.mxu0 %v642_v0  ;;  %518 = vmatprep.mubr.msk.bf16.mxu0 %vm643_vm0, %v642_v0  ;;  %v49_v1 = vld [vmem:[%s809_s1] sm:$0xf]  ;;  %v48_v4 = vpack.c.bf16 %v47_v2, %v47_v2  ;;  %vm57_vm2 = vcmask 64512   ;;  %v588_v6 = vld [vmem:[%s811_s3 + $0x8] sm:$0xff]   ;;  %v589_v7 = vld [vmem:[%s811_s3 + $0x10] sm:$0xff]   ;;  %vm450_vm3 = vcmask 31744  }
  0x14   :  { %522 = vmatprep.subr.bf16.mxu1 %v642_v0  ;;  %538 = vmatprep.mubr.msk.bf16.mxu1 %vm643_vm0, %v642_v0  ;;  %v63_v3 = vsel %vm61_vm1, %v49_v1, 0  ;;  %v587_v5 = vld [vmem:[%s811_s3] sm:$0xff]   ;;  %v590_v8 = vld [vmem:[%s811_s3 + $0x18] sm:$0xff]   ;;  %v592_v10 = vld [vmem:[%s811_s3 + $0x28] sm:$0xff]  }
  0x15   :  { %517 = vmatpush3.bf16.msra.mxu0 %v63_v3  ;;  %523 = vmatpush3.bf16.msra.mxu1 %v587_v5  ;;  %v591_v9 = vld [vmem:[%s811_s3 + $0x20] sm:$0xff]   ;;  %v593_v11 = vld [vmem:[%s811_s3 + $0x30] sm:$0xff]   ;;  %v594_v12 = vld [vmem:[%s811_s3 + $0x38] sm:$0xff]  }
  0x16   :  { %542 = vmatprep.subr.bf16.mxu0 %v642_v0  ;;  %524 = vmatprep.subr.bf16.mxu1 %v642_v0  ;;  %v595_v13 = vld [vmem:[#allocation2] sm:$0xff]   ;;  %v596_v14 = vld [vmem:[#allocation2 + $0x8] sm:$0xff]   ;;  %v597_v15 = vld [vmem:[#allocation2 + $0x10] sm:$0xff]  }
  0x17   :  { %v598_v16 = vld [vmem:[#allocation2 + $0x18] sm:$0xff]   ;;  %v599_v17 = vld [vmem:[#allocation2 + $0x20] sm:$0xff]   ;;  %v600_v18 = vld [vmem:[#allocation2 + $0x28] sm:$0xff]  }
  0x18   :  { %519 = vmatmul.mubr.msk.bf16.vlgmr.msra.gmra.mrb[0].mxu0 %vm57_vm2, %v48_v4  ;;  %v457_v19 = vld [vmem:[%s810_s2] ss:$0 sm:$0xff]  ;;  %v601_v27 = vld [vmem:[#allocation2 + $0x30] sm:$0xff]   ;;  %v602_v28 = vld [vmem:[#allocation2 + $0x38] sm:$0xff]  }
  0x19   :  { %558 = vmatprep.mubr.msk.bf16.mxu0 %vm643_vm0, %v642_v0  ;;  %525 = vmatpush3.bf16.msra.mxu1 %v588_v6  ;;  %v603_v29 = vld [vmem:[%s815_s7] sm:$0xff]   ;;  %v604_v30 = vld [vmem:[%s815_s7 + $0x8] sm:$0xff]   ;;  %v605_v31 = vld [vmem:[%s815_s7 + $0x10] sm:$0xff]  }
  0x1a   :  { %526 = vmatprep.subr.bf16.mxu1 %v642_v0  ;;  %543 = vmatpush3.bf16.msra.mxu0 %v595_v13  ;;  %v606_v32 = vld [vmem:[%s815_s7 + $0x18] sm:$0xff]   ;;  %v607_v33 = vld [vmem:[%s815_s7 + $0x20] sm:$0xff]   ;;  %v608_v34 = vld [vmem:[%s815_s7 + $0x28] sm:$0xff]  }
  0x1b   :  { %544 = vmatprep.subr.bf16.mxu0 %v642_v0  ;;  %v459_v35 = vld [vmem:[%s812_s4] ss:$0 sm:$0xff]  ;;  %v609_v43 = vld [vmem:[%s815_s7 + $0x30] sm:$0xff]   ;;  %v610_v44 = vld [vmem:[%s815_s7 + $0x38] sm:$0xff]  }
  0x1c   :  { %v468_v45 = vld [vmem:[%s814_s6] ss:$0 sm:$0xff] }
  0x1d   :  { %527 = vmatpush3.bf16.msra.mxu1 %v589_v7  ;;  %v477_v53 = vld [vmem:[%s816_s8] ss:$0 sm:$0xff] }
  0x1e   :  { %528 = vmatprep.subr.bf16.mxu1 %v642_v0  ;;  %545 = vmatpush3.bf16.msra.mxu0 %v596_v14 }
  0x1f   :  { %546 = vmatprep.subr.bf16.mxu0 %v642_v0 }
  0x21   :  { %529 = vmatpush3.bf16.msra.mxu1 %v590_v8 }
  0x22   :  { %530 = vmatprep.subr.bf16.mxu1 %v642_v0  ;;  %547 = vmatpush3.bf16.msra.mxu0 %v597_v15 }
  0x23   :  { %548 = vmatprep.subr.bf16.mxu0 %v642_v0 }
  0x25   :  { %531 = vmatpush3.bf16.msra.mxu1 %v591_v9 }
  0x26   :  { %532 = vmatprep.subr.bf16.mxu1 %v642_v0  ;;  %549 = vmatpush3.bf16.msra.mxu0 %v598_v16 }
  0x27   :  { %550 = vmatprep.subr.bf16.mxu0 %v642_v0 }
  0x29   :  { %533 = vmatpush3.bf16.msra.mxu1 %v592_v10 }
  0x2a   :  { %534 = vmatprep.subr.bf16.mxu1 %v642_v0  ;;  %551 = vmatpush3.bf16.msra.mxu0 %v599_v17 }
  0x2b   :  { %552 = vmatprep.subr.bf16.mxu0 %v642_v0 }
  0x2d   :  { %535 = vmatpush3.bf16.msra.mxu1 %v593_v11 }
  0x2e   :  { %536 = vmatprep.subr.bf16.mxu1 %v642_v0  ;;  %553 = vmatpush3.bf16.msra.mxu0 %v600_v18 }
  0x2f   :  { %554 = vmatprep.subr.bf16.mxu0 %v642_v0 }
  0x31   :  { %537 = vmatpush3.bf16.msra.mxu1 %v594_v12 }
  0x32   :  { %562 = vmatprep.subr.bf16.mxu1 %v642_v0  ;;  %555 = vmatpush3.bf16.msra.mxu0 %v601_v27 }
  0x33   :  { %556 = vmatprep.subr.bf16.mxu0 %v642_v0 }
  0x36   :  { %557 = vmatpush3.bf16.msra.mxu0 %v602_v28 }
  0xeb   :  { %v99_v20 = vpop.f32.mrb[0].mxu0 }
  0xec   :  { %v100_v21 = vadd.f32 %v457_v19, %v99_v20  ;;  %v520_v22 = vpop.f32.mrb[1].mxu0 }
  0xed   :  { %v102_v23 = vpop.f32.mrb[2].mxu0 }
  0xee   :  { %v105_v24 = vmax.f32 %v100_v21, 0.0  ;;  %v521_v25 = vpop.f32.mrb[3].mxu0 }
  0xf0   :  { %v106_v26 = vpack.c.bf16 %v105_v24, %v105_v24 }
  0xf2   :  { %539 = vmatmul.mubr.bf16.vlgmr.msra.gmra.mrb[0].mxu1 %v106_v26 }
  0xf3   :  { %578 = vmatprep.mubr.msk.bf16.mxu1 %vm643_vm0, %v642_v0  ;;  %563 = vmatpush3.bf16.msra.mxu1 %v603_v29 }
  0xf4   :  { %564 = vmatprep.subr.bf16.mxu1 %v642_v0 }
  0xf7   :  { %565 = vmatpush3.bf16.msra.mxu1 %v604_v30 }
  0xf8   :  { %566 = vmatprep.subr.bf16.mxu1 %v642_v0 }
  0xfb   :  { %567 = vmatpush3.bf16.msra.mxu1 %v605_v31 }
  0xfc   :  { %568 = vmatprep.subr.bf16.mxu1 %v642_v0 }
  0xff   :  { %569 = vmatpush3.bf16.msra.mxu1 %v606_v32 }
 0x100   :  { %570 = vmatprep.subr.bf16.mxu1 %v642_v0 }
 0x103   :  { %571 = vmatpush3.bf16.msra.mxu1 %v607_v33 }
 0x104   :  { %572 = vmatprep.subr.bf16.mxu1 %v642_v0 }
 0x107   :  { %573 = vmatpush3.bf16.msra.mxu1 %v608_v34 }
 0x108   :  { %574 = vmatprep.subr.bf16.mxu1 %v642_v0 }
 0x10b   :  { %575 = vmatpush3.bf16.msra.mxu1 %v609_v43 }
 0x10c   :  { %576 = vmatprep.subr.bf16.mxu1 %v642_v0 }
 0x10f   :  { %577 = vmatpush3.bf16.msra.mxu1 %v610_v44 }
 0x1c5   :  { %v212_v36 = vpop.f32.mrb[0].mxu1 }
 0x1c6   :  { %v213_v37 = vadd.f32 %v459_v35, %v212_v36  ;;  %v540_v38 = vpop.f32.mrb[1].mxu1 }
 0x1c7   :  { %v215_v39 = vpop.f32.mrb[2].mxu1 }
 0x1c8   :  { %v218_v40 = vmax.f32 %v213_v37, 0.0  ;;  %v541_v41 = vpop.f32.mrb[3].mxu1 }
 0x1ca   :  { %v219_v42 = vpack.c.bf16 %v218_v40, %v218_v40 }
 0x1cc   :  { %559 = vmatmul.mubr.bf16.vlgmr.msra.gmra.mrb[4].mxu0 %v219_v42 }
 0x29f   :  { %v325_v46 = vpop.f32.mrb[4].mxu0 }
 0x2a0   :  { %v326_v47 = vadd.f32 %v468_v45, %v325_v46  ;;  %v560_v48 = vpop.f32.mrb[5].mxu0 }
 0x2a1   :  { %v328_v49 = vpop.f32.mrb[6].mxu0 }
 0x2a2   :  { %v331_v50 = vmax.f32 %v326_v47, 0.0  ;;  %v561_v51 = vpop.f32.mrb[7].mxu0 }
 0x2a4   :  { %v332_v52 = vpack.c.bf16 %v331_v50, %v331_v50 }
 0x2a6   :  { %579 = vmatmul.mubr.bf16.vlgmr.msra.gmra.mrb[4].mxu1 %v332_v52 }
 0x379   :  { %v438_v54 = vpop.f32.mrb[4].mxu1 }
 0x37a   :  { %v439_v55 = vadd.f32 %v477_v53, %v438_v54  ;;  %v580_v56 = vpop.f32.mrb[5].mxu1 }
 0x37b   :  { %v441_v57 = vpop.f32.mrb[6].mxu1 }
 0x37c   :  { %v486_v58 = vmul.f32 -1.442695, %v439_v55  ;;  %v581_v59 = vpop.f32.mrb[7].mxu1 }
 0x37e   :  { %611 = vpow2.f32 %v486_v58 }
 0x388   :  { %v612_v60 = vpop.eup %611 }
 0x389   :  { %v447_v61 = vadd.f32 1.0, %v612_v60 }
 0x38b   :  { %613 = vrcp.f32 %v447_v61 }
 0x395   :  { %v614_v62 = vpop.eup %613 }
 0x396   :  { %451 = vst.msk [vmem:[%s817_s9] sm:$0xff] %vm450_vm3, %v614_v62 }
 0x397   :  { %456 = vsyncpa [#allocation3], 1 }

// kernel: tpu_custom_call.1
= control target key start
LH: loop header
LB: loop body
LE: loop exit
PB: predicated region body
PF: predicated region fallthrough
CT: control target
= control target key end

     0   :  { %14 = vsyncpa [#allocation3], 0  ;;  %s639_s30 = smov [#allocation2]   ;;  %s808_s0 = inlined_call_operand.vmem [shape: f32[8,8], index: 0, kind: input, shape index: {}]   ;;  %s809_s1 = inlined_call_operand.vmem [shape: bf16[8,128], index: 1, kind: input, shape index: {}]   ;;  %s810_s2 = inlined_call_operand.vmem [shape: f32[1,128], index: 2, kind: input, shape index: {}]   ;;  %s811_s3 = inlined_call_operand.vmem [shape: bf16[128,128], index: 3, kind: input, shape index: {}]   ;;  %s812_s4 = inlined_call_operand.vmem [shape: f32[1,128], index: 4, kind: input, shape index: {}]   ;;  %s813_s5 = inlined_call_operand.hbm [shape: bf16[128,128], index: 5, kind: input, shape index: {}]   ;;  %s814_s6 = inlined_call_operand.vmem [shape: f32[1,128], index: 6, kind: input, shape index: {}]   ;;  %s815_s7 = inlined_call_operand.vmem [shape: bf16[128,4], index: 7, kind: input, shape index: {}]   ;;  %s816_s8 = inlined_call_operand.vmem [shape: f32[1,4], index: 8, kind: input, shape index: {}]   ;;  %s817_s9 = inlined_call_operand.vmem [shape: f32[8,4], index: 9, kind: output, shape index: {}]  }
   0x1   :  { %s30_s10 = sshll.u32 %s639_s30, 4  ;;  %s615_s13 = scalar_lea.hbm %s813_s5, 1024  ;;  %s31_s10 = int_to_ptr.vmem [resolvable:$true] %s30_s10 }
   0x2   :  { %p616_p0 = scmp.ne.s32.totalorder %s813_s5, %s615_s13  ;;  %p619_p1 = scmp.lt.u32.totalorder %s615_s13, %s813_s5 }
   0x4   :  { %p621_p2 = pnand %p619_p1, %p616_p0 }
   0x6   :  { %624 = shalt.err (!%p621_p2)
}
   0x7   :  { %s625_s18 = scalar_lea.vmem %s31_s10, 1024  ;;  %p630_p4 = scmp.lt.s32.totalorder %s31_s10, %s31_s10 }
   0x8   :  { %p626_p3 = scmp.ne.s32.totalorder %s31_s10, %s625_s18  ;;  %p631_p5 = scmp.lt.s32.totalorder %s625_s18, %s625_s18 }
   0xa   :  { %p632_p6 = por %p631_p5, %p630_p4 }
   0xc   :  { %p633_p7 = pnand %p632_p6, %p626_p3 }
   0xe   :  { %636 = shalt.err (!%p633_p7)
}
   0xf   :  { %s640_s19 = smov 64   ;;  %s641_s20 = smov 4  }
  0x10   :  { %36 = dma.hbm_to_vmem [thread:$0]  %s813_s5, 1024, %s31_s10, [#allocation3], %s640_s19, %s640_s19, %s641_s20  }
  0x11   :  { %637 = dma.done.wait [#allocation3], 1024  }
  0x12   :  { %638 = vsyncadd [#allocation3], 4294966272  ;;  %v642_v0 = vmov 0.0   ;;  %vm643_vm0 = vmmov 0   ;;  %vm61_vm1 = vcmask 1043456   ;;  %v47_v2 = vld [vmem:[%s808_s0] sm:$0xff] }
  0x13   :  { %516 = vmatprep.subr.bf16.mxu0 %v642_v0  ;;  %518 = vmatprep.mubr.msk.bf16.mxu0 %vm643_vm0, %v642_v0  ;;  %v49_v1 = vld [vmem:[%s809_s1] sm:$0xf]  ;;  %v48_v4 = vpack.c.bf16 %v47_v2, %v47_v2  ;;  %vm57_vm2 = vcmask 64512   ;;  %v588_v6 = vld [vmem:[%s811_s3 + $0x8] sm:$0xff]   ;;  %v589_v7 = vld [vmem:[%s811_s3 + $0x10] sm:$0xff]   ;;  %vm450_vm3 = vcmask 31744  }
  0x14   :  { %522 = vmatprep.subr.bf16.mxu1 %v642_v0  ;;  %538 = vmatprep.mubr.msk.bf16.mxu1 %vm643_vm0, %v642_v0  ;;  %v63_v3 = vsel %vm61_vm1, %v49_v1, 0  ;;  %v587_v5 = vld [vmem:[%s811_s3] sm:$0xff]   ;;  %v590_v8 = vld [vmem:[%s811_s3 + $0x18] sm:$0xff]   ;;  %v592_v10 = vld [vmem:[%s811_s3 + $0x28] sm:$0xff]  }
  0x15   :  { %517 = vmatpush3.bf16.msra.mxu0 %v63_v3  ;;  %523 = vmatpush3.bf16.msra.mxu1 %v587_v5  ;;  %v591_v9 = vld [vmem:[%s811_s3 + $0x20] sm:$0xff]   ;;  %v593_v11 = vld [vmem:[%s811_s3 + $0x30] sm:$0xff]   ;;  %v594_v12 = vld [vmem:[%s811_s3 + $0x38] sm:$0xff]  }
  0x16   :  { %542 = vmatprep.subr.bf16.mxu0 %v642_v0  ;;  %524 = vmatprep.subr.bf16.mxu1 %v642_v0  ;;  %v595_v13 = vld [vmem:[#allocation2] sm:$0xff]   ;;  %v596_v14 = vld [vmem:[#allocation2 + $0x8] sm:$0xff]   ;;  %v597_v15 = vld [vmem:[#allocation2 + $0x10] sm:$0xff]  }
  0x17   :  { %v598_v16 = vld [vmem:[#allocation2 + $0x18] sm:$0xff]   ;;  %v599_v17 = vld [vmem:[#allocation2 + $0x20] sm:$0xff]   ;;  %v600_v18 = vld [vmem:[#allocation2 + $0x28] sm:$0xff]  }
  0x18   :  { %519 = vmatmul.mubr.msk.bf16.vlgmr.msra.gmra.mrb[0].mxu0 %vm57_vm2, %v48_v4  ;;  %v457_v19 = vld [vmem:[%s810_s2] ss:$0 sm:$0xff]  ;;  %v601_v27 = vld [vmem:[#allocation2 + $0x30] sm:$0xff]   ;;  %v602_v28 = vld [vmem:[#allocation2 + $0x38] sm:$0xff]  }
  0x19   :  { %558 = vmatprep.mubr.msk.bf16.mxu0 %vm643_vm0, %v642_v0  ;;  %525 = vmatpush3.bf16.msra.mxu1 %v588_v6  ;;  %v603_v29 = vld [vmem:[%s815_s7] sm:$0xff]   ;;  %v604_v30 = vld [vmem:[%s815_s7 + $0x8] sm:$0xff]   ;;  %v605_v31 = vld [vmem:[%s815_s7 + $0x10] sm:$0xff]  }
  0x1a   :  { %526 = vmatprep.subr.bf16.mxu1 %v642_v0  ;;  %543 = vmatpush3.bf16.msra.mxu0 %v595_v13  ;;  %v606_v32 = vld [vmem:[%s815_s7 + $0x18] sm:$0xff]   ;;  %v607_v33 = vld [vmem:[%s815_s7 + $0x20] sm:$0xff]   ;;  %v608_v34 = vld [vmem:[%s815_s7 + $0x28] sm:$0xff]  }
  0x1b   :  { %544 = vmatprep.subr.bf16.mxu0 %v642_v0  ;;  %v459_v35 = vld [vmem:[%s812_s4] ss:$0 sm:$0xff]  ;;  %v609_v43 = vld [vmem:[%s815_s7 + $0x30] sm:$0xff]   ;;  %v610_v44 = vld [vmem:[%s815_s7 + $0x38] sm:$0xff]  }
  0x1c   :  { %v468_v45 = vld [vmem:[%s814_s6] ss:$0 sm:$0xff] }
  0x1d   :  { %527 = vmatpush3.bf16.msra.mxu1 %v589_v7  ;;  %v477_v53 = vld [vmem:[%s816_s8] ss:$0 sm:$0xff] }
  0x1e   :  { %528 = vmatprep.subr.bf16.mxu1 %v642_v0  ;;  %545 = vmatpush3.bf16.msra.mxu0 %v596_v14 }
  0x1f   :  { %546 = vmatprep.subr.bf16.mxu0 %v642_v0 }
  0x21   :  { %529 = vmatpush3.bf16.msra.mxu1 %v590_v8 }
  0x22   :  { %530 = vmatprep.subr.bf16.mxu1 %v642_v0  ;;  %547 = vmatpush3.bf16.msra.mxu0 %v597_v15 }
  0x23   :  { %548 = vmatprep.subr.bf16.mxu0 %v642_v0 }
  0x25   :  { %531 = vmatpush3.bf16.msra.mxu1 %v591_v9 }
  0x26   :  { %532 = vmatprep.subr.bf16.mxu1 %v642_v0  ;;  %549 = vmatpush3.bf16.msra.mxu0 %v598_v16 }
  0x27   :  { %550 = vmatprep.subr.bf16.mxu0 %v642_v0 }
  0x29   :  { %533 = vmatpush3.bf16.msra.mxu1 %v592_v10 }
  0x2a   :  { %534 = vmatprep.subr.bf16.mxu1 %v642_v0  ;;  %551 = vmatpush3.bf16.msra.mxu0 %v599_v17 }
  0x2b   :  { %552 = vmatprep.subr.bf16.mxu0 %v642_v0 }
  0x2d   :  { %535 = vmatpush3.bf16.msra.mxu1 %v593_v11 }
  0x2e   :  { %536 = vmatprep.subr.bf16.mxu1 %v642_v0  ;;  %553 = vmatpush3.bf16.msra.mxu0 %v600_v18 }
  0x2f   :  { %554 = vmatprep.subr.bf16.mxu0 %v642_v0 }
  0x31   :  { %537 = vmatpush3.bf16.msra.mxu1 %v594_v12 }
  0x32   :  { %562 = vmatprep.subr.bf16.mxu1 %v642_v0  ;;  %555 = vmatpush3.bf16.msra.mxu0 %v601_v27 }
  0x33   :  { %556 = vmatprep.subr.bf16.mxu0 %v642_v0 }
  0x36   :  { %557 = vmatpush3.bf16.msra.mxu0 %v602_v28 }
  0xeb   :  { %v99_v20 = vpop.f32.mrb[0].mxu0 }
  0xec   :  { %v100_v21 = vadd.f32 %v457_v19, %v99_v20  ;;  %v520_v22 = vpop.f32.mrb[1].mxu0 }
  0xed   :  { %v102_v23 = vpop.f32.mrb[2].mxu0 }
  0xee   :  { %v105_v24 = vmax.f32 %v100_v21, 0.0  ;;  %v521_v25 = vpop.f32.mrb[3].mxu0 }
  0xf0   :  { %v106_v26 = vpack.c.bf16 %v105_v24, %v105_v24 }
  0xf2   :  { %539 = vmatmul.mubr.bf16.vlgmr.msra.gmra.mrb[0].mxu1 %v106_v26 }
  0xf3   :  { %578 = vmatprep.mubr.msk.bf16.mxu1 %vm643_vm0, %v642_v0  ;;  %563 = vmatpush3.bf16.msra.mxu1 %v603_v29 }
  0xf4   :  { %564 = vmatprep.subr.bf16.mxu1 %v642_v0 }
  0xf7   :  { %565 = vmatpush3.bf16.msra.mxu1 %v604_v30 }
  0xf8   :  { %566 = vmatprep.subr.bf16.mxu1 %v642_v0 }
  0xfb   :  { %567 = vmatpush3.bf16.msra.mxu1 %v605_v31 }
  0xfc   :  { %568 = vmatprep.subr.bf16.mxu1 %v642_v0 }
  0xff   :  { %569 = vmatpush3.bf16.msra.mxu1 %v606_v32 }
 0x100   :  { %570 = vmatprep.subr.bf16.mxu1 %v642_v0 }
 0x103   :  { %571 = vmatpush3.bf16.msra.mxu1 %v607_v33 }
 0x104   :  { %572 = vmatprep.subr.bf16.mxu1 %v642_v0 }
 0x107   :  { %573 = vmatpush3.bf16.msra.mxu1 %v608_v34 }
 0x108   :  { %574 = vmatprep.subr.bf16.mxu1 %v642_v0 }
 0x10b   :  { %575 = vmatpush3.bf16.msra.mxu1 %v609_v43 }
 0x10c   :  { %576 = vmatprep.subr.bf16.mxu1 %v642_v0 }
 0x10f   :  { %577 = vmatpush3.bf16.msra.mxu1 %v610_v44 }
 0x1c5   :  { %v212_v36 = vpop.f32.mrb[0].mxu1 }
 0x1c6   :  { %v213_v37 = vadd.f32 %v459_v35, %v212_v36  ;;  %v540_v38 = vpop.f32.mrb[1].mxu1 }
 0x1c7   :  { %v215_v39 = vpop.f32.mrb[2].mxu1 }
 0x1c8   :  { %v218_v40 = vmax.f32 %v213_v37, 0.0  ;;  %v541_v41 = vpop.f32.mrb[3].mxu1 }
 0x1ca   :  { %v219_v42 = vpack.c.bf16 %v218_v40, %v218_v40 }
 0x1cc   :  { %559 = vmatmul.mubr.bf16.vlgmr.msra.gmra.mrb[4].mxu0 %v219_v42 }
 0x29f   :  { %v325_v46 = vpop.f32.mrb[4].mxu0 }
 0x2a0   :  { %v326_v47 = vadd.f32 %v468_v45, %v325_v46  ;;  %v560_v48 = vpop.f32.mrb[5].mxu0 }
 0x2a1   :  { %v328_v49 = vpop.f32.mrb[6].mxu0 }
 0x2a2   :  { %v331_v50 = vmax.f32 %v326_v47, 0.0  ;;  %v561_v51 = vpop.f32.mrb[7].mxu0 }
 0x2a4   :  { %v332_v52 = vpack.c.bf16 %v331_v50, %v331_v50 }
 0x2a6   :  { %579 = vmatmul.mubr.bf16.vlgmr.msra.gmra.mrb[4].mxu1 %v332_v52 }
 0x379   :  { %v438_v54 = vpop.f32.mrb[4].mxu1 }
 0x37a   :  { %v439_v55 = vadd.f32 %v477_v53, %v438_v54  ;;  %v580_v56 = vpop.f32.mrb[5].mxu1 }
 0x37b   :  { %v441_v57 = vpop.f32.mrb[6].mxu1 }
 0x37c   :  { %v486_v58 = vmul.f32 -1.442695, %v439_v55  ;;  %v581_v59 = vpop.f32.mrb[7].mxu1 }
 0x37e   :  { %611 = vpow2.f32 %v486_v58 }
 0x388   :  { %v612_v60 = vpop.eup %611 }
 0x389   :  { %v447_v61 = vadd.f32 1.0, %v612_v60 }
 0x38b   :  { %613 = vrcp.f32 %v447_v61 }
 0x395   :  { %v614_v62 = vpop.eup %613 }
 0x396   :  { %451 = vst.msk [vmem:[%s817_s9] sm:$0xff] %vm450_vm3, %v614_v62 }
 0x397   :  { %456 = vsyncpa [#allocation3], 1 }

</bundles_post_ra>
